<compile_context>
chip_gen: v6e
topology: v6e:2x2x1
jax: 0.10.0
libtpu: 0.0.40
codegen_flags: <defaults>
</compile_context>

<pallas_src>
import jax
import jax.numpy as jnp
from jax.experimental import pallas as pl
from jax.experimental.pallas import tpu as pltpu

_LANE = 128
_SUBLANE = 8


def _round_up(v, m):
    return ((v + m - 1) // m) * m


def _mlp_kernel(x_ref, w1_ref, b1_ref, w2_ref, b2_ref, o_ref):
    # fc1 on the MXU (bf16 operands, f32 accumulation) + bias + tanh (EUP, f32).
    h = jnp.tanh(
        jnp.dot(x_ref[...], w1_ref[...], preferred_element_type=jnp.float32)
        + b1_ref[...]
    )                                                               # (tm, Hp) f32

    # fc2 on the MXU; padded output columns carry b2 = -1e30 so they vanish below.
    z = (
        jnp.dot(h.astype(jnp.bfloat16), w2_ref[...],
                preferred_element_type=jnp.float32)
        + b2_ref[...]
    )                                                               # (tm, Op) f32

    # Numerically stable softmax over the lane-dense padded O axis.
    z_max = jnp.max(z, axis=-1, keepdims=True)
    e = jnp.exp(z - z_max)
    denom = jnp.sum(e, axis=-1, keepdims=True)
    r = pl.reciprocal(denom, approx=True)        # EUP vrcp, own bundle slot
    r = r * (2.0 - denom * r)                    # one Newton step -> ~f32 accuracy
    o_ref[...] = (e * r).astype(o_ref.dtype)


def mlp_forward(x, w1, b1, w2, b2, *, tm=None, vmem_budget_bytes=40 << 20):
    """x: (B, D) f32; w1: (D, H); b1: (H,); w2: (H, O); b2: (O,). Returns softmax (B, O) f32."""
    B, D = x.shape
    H = w1.shape[1]
    O = w2.shape[1]

    # ---- pad all feature dims to lane width (128); numerically exact:
    #   * extra x cols are 0 and extra w1 rows are 0  -> no fc1 contribution
    #   * extra w1 cols / b1 entries are 0            -> h pad cols = tanh(0) = 0
    #   * extra w2 rows are 0                         -> no fc2 contribution
    #   * extra b2 entries are -1e30                  -> padded logits -> exp == 0
    Dp = _round_up(D, _LANE)
    Hp = _round_up(H, _LANE)
    Op = _round_up(O, _LANE)

    x_p = jnp.zeros((B, Dp), jnp.bfloat16).at[:, :D].set(x.astype(jnp.bfloat16))
    w1_p = jnp.zeros((Dp, Hp), jnp.bfloat16).at[:D, :H].set(w1.astype(jnp.bfloat16))
    b1_p = jnp.zeros((1, Hp), jnp.float32).at[0, :H].set(b1.astype(jnp.float32))
    w2_p = jnp.zeros((Hp, Op), jnp.bfloat16).at[:H, :O].set(w2.astype(jnp.bfloat16))
    b2_p = jnp.full((1, Op), -1e30, jnp.float32).at[0, :O].set(b2.astype(jnp.float32))

    if tm is None:
        # Single-buffered resident weight footprint (bf16 weights, f32 biases).
        weight_bytes = Dp * Hp * 2 + Hp * 4 + Hp * Op * 2 + Op * 4
        # Per batch-row VMEM: 2x bf16 x tile + 2x f32 out tile (double-buffered)
        # + f32 h + bf16 h + f32 z + f32 e intermediates.
        per_row = 4 * Dp + 6 * Hp + 16 * Op
        tm = max(_SUBLANE, (vmem_budget_bytes - weight_bytes) // per_row)
        tm = min(tm, 1024, _round_up(B, _SUBLANE))
        if B >= 2 * _SUBLANE:
            # Keep >=2 grid steps so ("parallel",) can shard batch over v7x's 2 TCs.
            tm = min(tm, _round_up(pl.cdiv(B, 2), _SUBLANE))
        tm = _round_up(tm, _SUBLANE)

    grid = (pl.cdiv(B, tm),)

    cost = pl.CostEstimate(
        flops=2 * B * (Dp * Hp + Hp * Op),
        transcendentals=B * (Hp + Op),
        bytes_accessed=(x_p.size * 2 + w1_p.size * 2 + w2_p.size * 2
                        + b1_p.size * 4 + b2_p.size * 4 + B * Op * 4),
    )

    out_padded = pl.pallas_call(
        _mlp_kernel,
        out_shape=jax.ShapeDtypeStruct((B, Op), jnp.float32),
        grid_spec=pltpu.PrefetchScalarGridSpec(
            num_scalar_prefetch=0,
            grid=grid,
            in_specs=[
                # x: tiled over batch, auto double-buffered.
                pl.BlockSpec((tm, Dp), lambda i: (i, 0)),
                # Resident weights/biases: constant index_map -> single buffer.
                pl.BlockSpec((Dp, Hp), lambda i: (0, 0), pipeline_mode=pl.Buffered(1)),
                pl.BlockSpec((1, Hp), lambda i: (0, 0), pipeline_mode=pl.Buffered(1)),
                pl.BlockSpec((Hp, Op), lambda i: (0, 0), pipeline_mode=pl.Buffered(1)),
                pl.BlockSpec((1, Op), lambda i: (0, 0), pipeline_mode=pl.Buffered(1)),
            ],
            out_specs=pl.BlockSpec((tm, Op), lambda i: (i, 0)),   # lane-dense store
        ),
        compiler_params=pltpu.CompilerParams(
            dimension_semantics=("parallel",),   # batch axis shards across TCs on v7x
            vmem_limit_bytes=48 << 20,           # headroom under v7x's 64 MiB physical
        ),
        cost_estimate=cost,
    )(x_p, w1_p, b1_p, w2_p, b2_p)

    return out_padded[:, :O]


def reference_jax(x, w1, b1, w2, b2):
    h = jnp.tanh(x @ w1 + b1)
    z = h @ w2 + b2
    z = z - jnp.max(z, axis=1, keepdims=True)
    e = jnp.exp(z)
    return e / jnp.sum(e, axis=1, keepdims=True)


def _torch_linear_init(key, fan_in, fan_out):
    """Matches torch.nn.Linear default init: U(-1/sqrt(fan_in), 1/sqrt(fan_in))."""
    kw, kb = jax.random.split(key)
    limit = 1.0 / (fan_in ** 0.5)
    w = jax.random.uniform(kw, (fan_out, fan_in), jnp.float32, -limit, limit)
    b = jax.random.uniform(kb, (fan_out,), jnp.float32, -limit, limit)
    return w, b


if __name__ == "__main__":
    # Small shapes implied by the module: (batch, input_size) -> hidden -> output
    batch, input_size, hidden_size, output_size = 8, 16, 32, 10

    key = jax.random.PRNGKey(0)
    kx, k1, k2 = jax.random.split(key, 3)

    x = jax.random.normal(kx, (batch, input_size), dtype=jnp.float32)

    w1_torch, b1 = _torch_linear_init(k1, input_size, hidden_size)   # (H, D), (H,)
    w2_torch, b2 = _torch_linear_init(k2, hidden_size, output_size)  # (O, H), (O,)

    # Pre-transpose for the kernel's x @ W layout.
    w1 = w1_torch.T                                                   # (D, H)
    w2 = w2_torch.T                                                   # (H, O)

    y = mlp_forward(x, w1, b1, w2, b2)
    y = jax.block_until_ready(y)

    y_ref = reference_jax(x, w1, b1, w2, b2)
    assert y.shape == (batch, output_size)
    # bf16 MXU operands -> loosened tolerance vs the f32 reference.
    assert jnp.allclose(y, y_ref, atol=2e-2, rtol=2e-2), "mismatch vs reference"
    # Softmax rows must sum to 1 (approx reciprocal + Newton step keeps this tight).
    assert jnp.allclose(jnp.sum(y, axis=1), 1.0, atol=1e-3), "softmax rows do not sum to 1"

    print("KERNEL_OK")
</pallas_src>

<mosaic_0001>
module attributes {stable_mosaic.version = 11 : i64} {
  func.func @_mlp_kernel(%arg0: i32, %arg1: memref<8x128xbf16, #tpu.memory_space<vmem>>, %arg2: memref<128x128xbf16, #tpu.memory_space<vmem>>, %arg3: memref<1x128xf32, #tpu.memory_space<vmem>>, %arg4: memref<128x128xbf16, #tpu.memory_space<vmem>>, %arg5: memref<1x128xf32, #tpu.memory_space<vmem>>, %arg6: memref<8x128xf32, #tpu.memory_space<vmem>>) attributes {dimension_semantics = [#tpu.dimension_semantics<parallel>], iteration_bounds = array<i64: 1>, scalar_prefetch = 0 : i64, scratch_operands = 0 : i64, tpu.core_type = #tpu.core_type<tc>, window_params = [{transform_indices = @transform_0, window_bounds = array<i64: 8, 128>}, {pipeline_mode = #tpu.pipeline_mode<synchronous>, transform_indices = @transform_1, window_bounds = array<i64: 128, 128>}, {pipeline_mode = #tpu.pipeline_mode<synchronous>, transform_indices = @transform_2, window_bounds = array<i64: 1, 128>}, {pipeline_mode = #tpu.pipeline_mode<synchronous>, transform_indices = @transform_3, window_bounds = array<i64: 128, 128>}, {pipeline_mode = #tpu.pipeline_mode<synchronous>, transform_indices = @transform_4, window_bounds = array<i64: 1, 128>}, {transform_indices = @transform_5, window_bounds = array<i64: 8, 128>}]} {
    %c0 = arith.constant 0 : index
    %c0_0 = arith.constant 0 : index
    %0 = vector.load %arg1[%c0, %c0_0] : memref<8x128xbf16, #tpu.memory_space<vmem>>, vector<8x128xbf16>
    %c0_1 = arith.constant 0 : index
    %c0_2 = arith.constant 0 : index
    %1 = vector.load %arg2[%c0_1, %c0_2] : memref<128x128xbf16, #tpu.memory_space<vmem>>, vector<128x128xbf16>
    %cst = arith.constant dense<0.000000e+00> : vector<8x128xf32>
    %2 = tpu.matmul %0, %1, %cst {dimension_numbers = #tpu.dot_dimension_numbers<[1], [0], [0], [1], [0, 0, 1, 1], [], []>} : vector<8x128xbf16>, vector<128x128xbf16>, vector<8x128xf32> -> vector<8x128xf32>
    %c0_3 = arith.constant 0 : index
    %c0_4 = arith.constant 0 : index
    %3 = vector.load %arg3[%c0_3, %c0_4] : memref<1x128xf32, #tpu.memory_space<vmem>>, vector<1x128xf32>
    %4 = vector.broadcast %3 : vector<1x128xf32> to vector<8x128xf32>
    %5 = arith.addf %2, %4 : vector<8x128xf32>
    %6 = math.tanh %5 : vector<8x128xf32>
    %7 = arith.truncf %6 : vector<8x128xf32> to vector<8x128xbf16>
    %c0_5 = arith.constant 0 : index
    %c0_6 = arith.constant 0 : index
    %8 = vector.load %arg4[%c0_5, %c0_6] : memref<128x128xbf16, #tpu.memory_space<vmem>>, vector<128x128xbf16>
    %cst_7 = arith.constant dense<0.000000e+00> : vector<8x128xf32>
    %9 = tpu.matmul %7, %8, %cst_7 {dimension_numbers = #tpu.dot_dimension_numbers<[1], [0], [0], [1], [0, 0, 1, 1], [], []>} : vector<8x128xbf16>, vector<128x128xbf16>, vector<8x128xf32> -> vector<8x128xf32>
    %c0_8 = arith.constant 0 : index
    %c0_9 = arith.constant 0 : index
    %10 = vector.load %arg5[%c0_8, %c0_9] : memref<1x128xf32, #tpu.memory_space<vmem>>, vector<1x128xf32>
    %11 = vector.broadcast %10 : vector<1x128xf32> to vector<8x128xf32>
    %12 = arith.addf %9, %11 : vector<8x128xf32>
    %cst_10 = arith.constant dense<0xFF800000> : vector<8xf32>
    %13 = vector.multi_reduction <maximumf>, %12, %cst_10 [1] : vector<8x128xf32> to vector<8xf32>
    %14 = vector.shape_cast %13 : vector<8xf32> to vector<8x1xf32>
    %15 = vector.broadcast %14 : vector<8x1xf32> to vector<8x128xf32>
    %16 = arith.subf %12, %15 : vector<8x128xf32>
    %17 = math.exp %16 : vector<8x128xf32>
    %cst_11 = arith.constant dense<0.000000e+00> : vector<8xf32>
    %18 = vector.multi_reduction <add>, %17, %cst_11 [1] : vector<8x128xf32> to vector<8xf32>
    %19 = vector.shape_cast %18 : vector<8xf32> to vector<8x1xf32>
    %20 = tpu.reciprocal %19 {approx = true} : vector<8x1xf32> -> vector<8x1xf32>
    %21 = arith.mulf %19, %20 : vector<8x1xf32>
    %cst_12 = arith.constant 2.000000e+00 : f32
    %22 = vector.broadcast %cst_12 : f32 to vector<8x1xf32>
    %23 = arith.subf %22, %21 : vector<8x1xf32>
    %24 = arith.mulf %20, %23 : vector<8x1xf32>
    %25 = vector.broadcast %24 : vector<8x1xf32> to vector<8x128xf32>
    %26 = arith.mulf %17, %25 : vector<8x128xf32>
    %c0_13 = arith.constant 0 : index
    %c0_14 = arith.constant 0 : index
    %27 = vector.load %arg6[%c0_13, %c0_14] : memref<8x128xf32, #tpu.memory_space<vmem>>, vector<8x128xf32>
    tpu.vector_store %arg6[%c0_13, %c0_14], %26 {strides = array<i32>} : memref<8x128xf32, #tpu.memory_space<vmem>>, vector<8x128xf32>,
    return
  }
  func.func @transform_0(%arg0: i32) -> (i32, i32) {
    %c0_i32 = arith.constant 0 : i32
    %c0_i32_0 = arith.constant 0 : i32
    return %arg0, %c0_i32 : i32, i32
  }
  func.func @transform_1(%arg0: i32) -> (i32, i32) {
    %c0_i32 = arith.constant 0 : i32
    %c0_i32_0 = arith.constant 0 : i32
    %c0_i32_1 = arith.constant 0 : i32
    return %c0_i32, %c0_i32_0 : i32, i32
  }
  func.func @transform_2(%arg0: i32) -> (i32, i32) {
    %c0_i32 = arith.constant 0 : i32
    %c0_i32_0 = arith.constant 0 : i32
    %c0_i32_1 = arith.constant 0 : i32
    return %c0_i32, %c0_i32_0 : i32, i32
  }
  func.func @transform_3(%arg0: i32) -> (i32, i32) {
    %c0_i32 = arith.constant 0 : i32
    %c0_i32_0 = arith.constant 0 : i32
    %c0_i32_1 = arith.constant 0 : i32
    return %c0_i32, %c0_i32_0 : i32, i32
  }
  func.func @transform_4(%arg0: i32) -> (i32, i32) {
    %c0_i32 = arith.constant 0 : i32
    %c0_i32_0 = arith.constant 0 : i32
    %c0_i32_1 = arith.constant 0 : i32
    return %c0_i32, %c0_i32_0 : i32, i32
  }
  func.func @transform_5(%arg0: i32) -> (i32, i32) {
    %c0_i32 = arith.constant 0 : i32
    %c0_i32_0 = arith.constant 0 : i32
    return %arg0, %c0_i32 : i32, i32
  }
}

</mosaic_0001>

<bundles_post_ra>
// kernel: tpu_custom_call.1
= control target key start
LH: loop header
LB: loop body
LE: loop exit
PB: predicated region body
PF: predicated region fallthrough
CT: control target
= control target key end

     0   :  { %10 = vsyncpa [#allocation3], 0  ;;  %s563_s0 = inlined_call_operand.hbm [shape: bf16[8,128], index: 0, kind: input, shape index: {}]   ;;  %s564_s1 = inlined_call_operand.hbm [shape: bf16[128,128], index: 1, kind: input, shape index: {}]   ;;  %s565_s2 = inlined_call_operand.vmem [shape: f32[1,128], index: 2, kind: input, shape index: {}]   ;;  %s566_s3 = inlined_call_operand.hbm [shape: bf16[128,128], index: 3, kind: input, shape index: {}]   ;;  %s567_s4 = inlined_call_operand.vmem [shape: f32[1,128], index: 4, kind: input, shape index: {}]   ;;  %s568_s5 = inlined_call_operand.hbm [shape: f32[8,128], index: 5, kind: output, shape index: {}]  }
   0x1   :  { %11 = vsyncpa [#allocation6], 0 }
   0x2   :  { %12 = vsyncpa [#allocation4], 0  ;;  %s507_s18 = smov [#allocation5]  }
   0x3   :  { %s28_s19 = sshll.u32 %s507_s18, 4  ;;  %s29_s19 = int_to_ptr.vmem [resolvable:$true] %s28_s19 }
   0x4   :  { %s429_s20 = scalar_lea.vmem %s29_s19, 1024  ;;  %p434_p1 = scmp.lt.s32.totalorder %s29_s19, %s29_s19 }
   0x5   :  { %p430_p0 = scmp.ne.s32.totalorder %s29_s19, %s429_s20  ;;  %p435_p2 = scmp.lt.s32.totalorder %s429_s20, %s429_s20 }
   0x7   :  { %p436_p3 = por %p435_p2, %p434_p1 }
   0x9   :  { %p437_p4 = pnand %p436_p3, %p430_p0 }
   0xb   :  { %440 = shalt.err (!%p437_p4)
}
   0xc   :  { %s508_s21 = smov 64   ;;  %s509_s22 = smov 4  }
   0xd   :  { %34 = dma.hbm_to_vmem [thread:$0]  %s564_s1, 1024, %s29_s19, [#allocation6], %s508_s21, %s508_s21, %s509_s22  }
   0xe   :  { %s510_s25 = smov [#allocation2]   ;;  %s511_s27 = smov [#allocation7]  }
   0xf   :  { %s19_s26 = sshll.u32 %s510_s25, 4  ;;  %s42_s28 = sshll.u32 %s511_s27, 4  ;;  %s20_s26 = int_to_ptr.vmem [resolvable:$true] %s19_s26  ;;  %s43_s28 = int_to_ptr.vmem [resolvable:$true] %s42_s28 }
  0x10   :  { %s449_s29 = scalar_lea.vmem %s20_s26, 64  ;;  %p454_p6 = scmp.lt.s32.totalorder %s20_s26, %s20_s26 }
  0x11   :  { %p450_p5 = scmp.ne.s32.totalorder %s20_s26, %s449_s29  ;;  %p455_p7 = scmp.lt.s32.totalorder %s449_s29, %s449_s29 }
  0x13   :  { %p456_p8 = por %p455_p7, %p454_p6 }
  0x15   :  { %p457_p9 = pnand %p456_p8, %p450_p5 }
  0x17   :  { %460 = shalt.err (!%p457_p9)
}
  0x18   :  { %22 = dma.hbm_to_vmem [thread:$0]  %s563_s0, 64, %s20_s26, [#allocation3]  }
  0x19   :  { %s469_s7 = scalar_lea.vmem %s43_s28, 1024  ;;  %p474_p11 = scmp.lt.s32.totalorder %s43_s28, %s43_s28 }
  0x1a   :  { %p470_p10 = scmp.ne.s32.totalorder %s43_s28, %s469_s7  ;;  %p475_p12 = scmp.lt.s32.totalorder %s469_s7, %s469_s7 }
  0x1c   :  { %p476_p13 = por %p475_p12, %p474_p11 }
  0x1e   :  { %p477_p0 = pnand %p476_p13, %p470_p10 }
  0x20   :  { %480 = shalt.err (!%p477_p0)
}
  0x21   :  { %48 = dma.hbm_to_vmem [thread:$0]  %s566_s3, 1024, %s43_s28, [#allocation6], %s508_s21, %s508_s21, %s509_s22  }
  0x22   :  { %501 = dma.done.wait [#allocation3], 64  }
  0x23   :  { %502 = vsyncadd [#allocation3], 4294967232 }
  0x24   :  { %503 = dma.done.wait [#allocation6], 2048  }
  0x25   :  { %504 = vsyncadd [#allocation6], 4294965248  ;;  %v512_v0 = vmov 0.0   ;;  %vm513_vm0 = vmmov 0   ;;  %v399_v1 = vld [vmem:[#allocation5 + $0x38] sm:$0xff]   ;;  %v400_v2 = vld [vmem:[#allocation5 + $0x30] sm:$0xff]  }
  0x26   :  { %351 = vmatprep.subr.bf16.mxu0 %v512_v0  ;;  %367 = vmatprep.mubr.msk.bf16.mxu0 %vm513_vm0, %v512_v0  ;;  %v401_v3 = vld [vmem:[#allocation5 + $0x28] sm:$0xff]   ;;  %v407_v4 = vld [vmem:[#allocation7 + $0x38] sm:$0xff]   ;;  %v402_v5 = vld [vmem:[#allocation5 + $0x20] sm:$0xff]  }
  0x27   :  { %371 = vmatprep.subr.bf16.mxu1 %v512_v0  ;;  %387 = vmatprep.mubr.msk.bf16.mxu1 %vm513_vm0, %v512_v0  ;;  %v408_v6 = vld [vmem:[#allocation7 + $0x30] sm:$0xff]   ;;  %v403_v7 = vld [vmem:[#allocation5 + $0x18] sm:$0xff]   ;;  %v409_v8 = vld [vmem:[#allocation7 + $0x28] sm:$0xff]  }
  0x28   :  { %352 = vmatpush3.bf16.msra.mxu0 %v399_v1  ;;  %372 = vmatpush3.bf16.msra.mxu1 %v407_v4  ;;  %v404_v9 = vld [vmem:[#allocation5 + $0x10] sm:$0xff]   ;;  %v405_v10 = vld [vmem:[#allocation5 + $0x8] sm:$0xff]   ;;  %v406_v11 = vld [vmem:[#allocation5] sm:$0xff]  }
  0x29   :  { %353 = vmatprep.subr.bf16.mxu0 %v512_v0  ;;  %373 = vmatprep.subr.bf16.mxu1 %v512_v0  ;;  %v61_v12 = vld [vmem:[#allocation2] sm:$0xf]  ;;  %v410_v13 = vld [vmem:[#allocation7 + $0x20] sm:$0xff]   ;;  %v412_v15 = vld [vmem:[#allocation7 + $0x10] sm:$0xff]  }
  0x2a   :  { %v411_v14 = vld [vmem:[#allocation7 + $0x18] sm:$0xff]   ;;  %v413_v16 = vld [vmem:[#allocation7 + $0x8] sm:$0xff]   ;;  %v414_v17 = vld [vmem:[#allocation7] sm:$0xff]  }
  0x2b   :  { %v315_v18 = vld [vmem:[%s565_s2] ss:$0 sm:$0xff]  ;;  %s514_s2 = smov [#allocation8]  }
  0x2c   :  { %354 = vmatpush3.bf16.msra.mxu0 %v400_v2  ;;  %374 = vmatpush3.bf16.msra.mxu1 %v408_v6  ;;  %v324_v26 = vld [vmem:[%s567_s4] ss:$0 sm:$0xff]  ;;  %s305_s11 = sshll.u32 %s514_s2, 4  ;;  %s306_s11 = int_to_ptr.vmem [resolvable:$true] %s305_s11 }
  0x2d   :  { %355 = vmatprep.subr.bf16.mxu0 %v512_v0  ;;  %375 = vmatprep.subr.bf16.mxu1 %v512_v0  ;;  %s481_s4 = scalar_lea.vmem %s306_s11, 128  ;;  %p486_p2 = scmp.lt.s32.totalorder %s306_s11, %s306_s11 }
  0x2e   :  { %p482_p1 = scmp.ne.s32.totalorder %s306_s11, %s481_s4  ;;  %p487_p3 = scmp.lt.s32.totalorder %s481_s4, %s481_s4 }
  0x30   :  { %356 = vmatpush3.bf16.msra.mxu0 %v401_v3  ;;  %376 = vmatpush3.bf16.msra.mxu1 %v409_v8  ;;  %p488_p4 = por %p487_p3, %p486_p2 }
  0x31   :  { %357 = vmatprep.subr.bf16.mxu0 %v512_v0  ;;  %377 = vmatprep.subr.bf16.mxu1 %v512_v0 }
  0x32   :  { %p489_p5 = pnand %p488_p4, %p482_p1 }
  0x34   :  { %358 = vmatpush3.bf16.msra.mxu0 %v402_v5  ;;  %378 = vmatpush3.bf16.msra.mxu1 %v410_v13 }
  0x35   :  { %359 = vmatprep.subr.bf16.mxu0 %v512_v0  ;;  %379 = vmatprep.subr.bf16.mxu1 %v512_v0 }
  0x38   :  { %360 = vmatpush3.bf16.msra.mxu0 %v403_v7  ;;  %380 = vmatpush3.bf16.msra.mxu1 %v411_v14 }
  0x39   :  { %361 = vmatprep.subr.bf16.mxu0 %v512_v0  ;;  %381 = vmatprep.subr.bf16.mxu1 %v512_v0 }
  0x3c   :  { %362 = vmatpush3.bf16.msra.mxu0 %v404_v9  ;;  %382 = vmatpush3.bf16.msra.mxu1 %v412_v15 }
  0x3d   :  { %363 = vmatprep.subr.bf16.mxu0 %v512_v0  ;;  %383 = vmatprep.subr.bf16.mxu1 %v512_v0 }
  0x40   :  { %364 = vmatpush3.bf16.msra.mxu0 %v405_v10  ;;  %384 = vmatpush3.bf16.msra.mxu1 %v413_v16 }
  0x41   :  { %365 = vmatprep.subr.bf16.mxu0 %v512_v0  ;;  %385 = vmatprep.subr.bf16.mxu1 %v512_v0 }
  0x44   :  { %366 = vmatpush3.bf16.msra.mxu0 %v406_v11  ;;  %386 = vmatpush3.bf16.msra.mxu1 %v414_v17 }
  0x47   :  { %368 = vmatmul.mubr.bf16.vlgmr.msra.gmra.mxu0 %v61_v12 }
 0x107   :  { %v167_v19 = vpop.f32.mrf.mxu0 }
 0x108   :  { %v168_v20 = vadd.f32 %v315_v18, %v167_v19 }
 0x109   :  { %v369_v21 = vpop.f32.mrf.mxu0 }
 0x10a   :  { %415 = vtanh.f32 %v168_v20 }
 0x10b   :  { %v170_v22 = vpop.f32.mrf.mxu0 }
 0x10d   :  { %v370_v23 = vpop.f32.mrf.mxu0 }
 0x117   :  { %v416_v24 = vpop.eup %415 }
 0x118   :  { %v174_v25 = vpack.c.bf16 %v416_v24, %v416_v24 }
 0x11a   :  { %388 = vmatmul.mubr.bf16.vlgmr.msra.gmra.mxu1 %v174_v25 }
 0x1da   :  { %v280_v27 = vpop.f32.mrf.mxu1 }
 0x1db   :  { %v281_v28 = vadd.f32 %v324_v26, %v280_v27 }
 0x1dc   :  { %v389_v29 = vpop.f32.mrf.mxu1 }
 0x1dd   :  { %286 = vmax.xlane.f32.xlu0 %v281_v28 }
 0x1de   :  { %v283_v30 = vpop.f32.mrf.mxu1 }
 0x1e0   :  { %v390_v31 = vpop.f32.mrf.mxu1 }
 0x266   :  { %v287_v32 = vpop.xlane.xlu0 %286 }
 0x267   :  { %v288_v33 = vsub.f32 %v281_v28, %v287_v32 }
 0x269   :  { %v289_v34 = vmul.f32 1.442695, %v288_v33 }
 0x26b   :  { %417 = vpow2.f32 %v289_v34 }
 0x278   :  { %v418_v35 = vpop.eup %417 }
 0x279   :  { %291 = vadd.xlane.f32.xlu0 %v418_v35 }
 0x302   :  { %v292_v36 = vpop.xlane.xlu0 %291 }
 0x303   :  { %419 = vrcp.f32 %v292_v36 }
 0x310   :  { %v420_v37 = vpop.eup %419 }
 0x311   :  { %v294_v38 = vmul.f32 %v420_v37, %v292_v36 }
 0x313   :  { %v295_v39 = vsub.f32 2.0, %v294_v38 }
 0x315   :  { %v296_v40 = vmul.f32 %v420_v37, %v295_v39 }
 0x317   :  { %v297_v41 = vmul.f32 %v418_v35, %v296_v40 }
 0x319   :  { %298 = vst [vmem:[#allocation8] sm:$0xff] %v297_v41 }
 0x31a   :  { %492 = shalt.err (!%p489_p5)
}
 0x31b   :  { %308 = dma.vmem_to_hbm [thread:$0]  %s306_s11, 128, %s568_s5, [#allocation4]  }
 0x31c   :  { %505 = dma.done.wait [#allocation4], 128  }
 0x31d   :  { %506 = vsyncadd [#allocation4], 4294967168 }
 0x31e   :  { %312 = vsyncpa [#allocation3], 1 }
 0x31f   :  { %313 = vsyncpa [#allocation6], 1 }
 0x320   :  { %314 = vsyncpa [#allocation4], 1 }

</bundles_post_ra>
